<compile_context>
chip_gen: v7x
topology: tpu7x:2x2x1
jax: 0.10.0
libtpu: 0.0.40
codegen_flags: <defaults>
</compile_context>

<pallas_src>
import math
import functools

import jax
import jax.numpy as jnp
from jax.experimental import pallas as pl
from jax.experimental.pallas import tpu as pltpu


# ------------------------------- helpers --------------------------------------

def _row_tile(m):
    """Pick a row-tile size that divides m (prefer large, sublane-friendly)."""
    for tm in (512, 256, 128, 64, 32, 16, 8):
        if m % tm == 0:
            return tm
    return m


def rope_tables(seq_len, head_dim, rope_theta=10000.0):
    """cos and sign-folded sin tables, both (S, D) f32.

    rope(x) = x * cos + concat(x2, x1) * sin_signed, which equals the module's
    x * cos + rotate_half(x) * sin  (rotate_half = cat(-x2, x1)).
    """
    inv_freq = 1.0 / (rope_theta ** (jnp.arange(0, head_dim, 2, dtype=jnp.float32) / head_dim))
    t = jnp.arange(seq_len, dtype=jnp.float32)
    freqs = jnp.outer(t, inv_freq)                      # (S, D/2)
    emb = jnp.concatenate([freqs, freqs], axis=-1)      # (S, D)
    cos = jnp.cos(emb)
    sin = jnp.sin(emb)
    sign = jnp.where(jnp.arange(head_dim) < head_dim // 2, -1.0, 1.0).astype(jnp.float32)
    return cos, sin * sign


def causal_bias(seq_len):
    """Additive causal-mask bias (0 on/below diagonal, -1e30 above), (S, S) f32."""
    mask = jnp.triu(jnp.ones((seq_len, seq_len), dtype=bool), k=1)
    return jnp.where(mask, -1e30, 0.0).astype(jnp.float32)


def prepare_params(torch_layout_params):
    """Fold transposes / QKV concat into parameter prep (done once, outside kernels)."""
    p = torch_layout_params
    return {
        # (Din, 3*Dout): x @ wqkv_t == [x @ q_w.T | x @ k_w.T | x @ v_w.T]
        "wqkv_t": jnp.concatenate([p["q_w"].T, p["k_w"].T, p["v_w"].T], axis=1),
        "o_w_t": p["o_w"].T,  # (Din, Dout)
    }


# ------------------------- fused QKV projection kernel -------------------------

def _qkv_proj_kernel(x_ref, w_ref, q_ref, k_ref, v_ref, *, dmodel):
    # x_ref: (tm, Din), w_ref: (Din, 3*dmodel); bf16 MXU inputs, f32 accumulation.
    x = x_ref[...].astype(jnp.bfloat16)
    w = w_ref[...].astype(jnp.bfloat16)
    y = jnp.dot(x, w, preferred_element_type=jnp.float32)     # (tm, 3*dmodel)
    q_ref[...] = y[:, :dmodel].astype(q_ref.dtype)
    k_ref[...] = y[:, dmodel:2 * dmodel].astype(k_ref.dtype)
    v_ref[...] = y[:, 2 * dmodel:].astype(v_ref.dtype)


def qkv_proj(x, wqkv_t, dmodel):
    """x: (M, Din), wqkv_t: (Din, 3*dmodel) -> (q, k, v) each (M, dmodel)."""
    M, Din = x.shape
    Dout3 = wqkv_t.shape[1]
    tm = _row_tile(M)
    kernel = functools.partial(_qkv_proj_kernel, dmodel=dmodel)
    out_sds = jax.ShapeDtypeStruct((M, dmodel), x.dtype)
    return pl.pallas_call(
        kernel,
        out_shape=(out_sds, out_sds, out_sds),
        grid=(M // tm,),
        in_specs=[
            pl.BlockSpec((tm, Din), lambda m: (m, 0)),
            pl.BlockSpec((Din, Dout3), lambda m: (0, 0)),   # constant block -> stays resident
        ],
        out_specs=[
            pl.BlockSpec((tm, dmodel), lambda m: (m, 0)),
            pl.BlockSpec((tm, dmodel), lambda m: (m, 0)),
            pl.BlockSpec((tm, dmodel), lambda m: (m, 0)),
        ],
        compiler_params=pltpu.CompilerParams(dimension_semantics=("parallel",)),
        cost_estimate=pl.CostEstimate(
            flops=2 * M * Din * Dout3,
            transcendentals=0,
            bytes_accessed=4 * (M * Din + Din * Dout3 + M * Dout3),
        ),
    )(x, wqkv_t)


# ------------------------------ linear (o-proj) --------------------------------

def _linear_kernel(x_ref, w_ref, o_ref):
    # x_ref: (tm, Din), w_ref: (Din, Dout) (pre-transposed); y = x @ w.
    x = x_ref[...].astype(jnp.bfloat16)
    w = w_ref[...].astype(jnp.bfloat16)
    o_ref[...] = jnp.dot(x, w, preferred_element_type=jnp.float32).astype(o_ref.dtype)


def linear(x, w_t):
    """x: (M, Din), w_t: (Din, Dout) -> (M, Dout)."""
    M, Din = x.shape
    Dout = w_t.shape[1]
    tm = _row_tile(M)
    return pl.pallas_call(
        _linear_kernel,
        out_shape=jax.ShapeDtypeStruct((M, Dout), x.dtype),
        grid=(M // tm,),
        in_specs=[
            pl.BlockSpec((tm, Din), lambda m: (m, 0)),
            pl.BlockSpec((Din, Dout), lambda m: (0, 0)),
        ],
        out_specs=pl.BlockSpec((tm, Dout), lambda m: (m, 0)),
        compiler_params=pltpu.CompilerParams(dimension_semantics=("parallel",)),
        cost_estimate=pl.CostEstimate(
            flops=2 * M * Din * Dout,
            transcendentals=0,
            bytes_accessed=4 * (M * Din + Din * Dout + M * Dout),
        ),
    )(x, w_t)


# ------------------------------ attention core ---------------------------------

def _attention_kernel(q_ref, k_ref, v_ref, cos_ref, sin_ref, bias_ref, o_ref, *, scale):
    # q/k/v refs: (1, S, H, D) block for one batch; cos/sin: (S, D); bias: (S, S).
    q = q_ref[0].astype(jnp.float32)          # (S, H, D)
    k = k_ref[0].astype(jnp.float32)
    v = v_ref[0].astype(jnp.bfloat16)         # PV matmul input
    S, H, D = q.shape
    half = D // 2

    cos = cos_ref[...][:, None, :]            # (S, 1, D) -> broadcast over heads
    sin = sin_ref[...][:, None, :]            # sign already folded in

    def rope(x):
        # concat(x2, x1) * sin_signed == rotate_half(x) * sin
        x_rot = jnp.concatenate([x[..., half:], x[..., :half]], axis=-1)
        return x * cos + x_rot * sin

    qh = (rope(q) * scale).astype(jnp.bfloat16)   # fold 1/sqrt(D) into q
    kh = rope(k).astype(jnp.bfloat16)

    # Scores for all heads: (H, S, S); bf16 MXU inputs, f32 accumulation,
    # contraction on the last dim of both operands (no k.T materialized).
    s = jnp.einsum("qhd,khd->hqk", qh, kh, preferred_element_type=jnp.float32)
    s = s + bias_ref[...][None, :, :]             # additive causal bias (0 / -1e30)

    # softmax in f32 (matches F.softmax(scores.float(), dim=-1))
    m = jnp.max(s, axis=-1, keepdims=True)
    e = jnp.exp(s - m)
    p = e * pl.reciprocal(jnp.sum(e, axis=-1, keepdims=True), approx=True)

    out = jnp.einsum("hqk,khd->qhd", p.astype(jnp.bfloat16), v,
                     preferred_element_type=jnp.float32)        # (S, H, D)
    # Lane-dense store: (S, H*D) with H*D a multiple of 128.
    o_ref[0] = out.reshape(S, H * D).astype(o_ref.dtype)


def attention(q, k, v, cos, sin_signed, bias):
    """q,k,v: (B, S, H, D); cos,sin_signed: (S, D); bias: (S, S) -> (B, S, H*D)."""
    B, S, H, D = q.shape
    dim = H * D
    kernel = functools.partial(_attention_kernel, scale=1.0 / math.sqrt(D))
    qkv_spec = pl.BlockSpec((1, S, H, D), lambda b: (b, 0, 0, 0))
    sd_spec = pl.BlockSpec((S, D), lambda b: (0, 0))
    ss_spec = pl.BlockSpec((S, S), lambda b: (0, 0))
    return pl.pallas_call(
        kernel,
        out_shape=jax.ShapeDtypeStruct((B, S, dim), q.dtype),
        grid=(B,),
        in_specs=[qkv_spec, qkv_spec, qkv_spec, sd_spec, sd_spec, ss_spec],
        out_specs=pl.BlockSpec((1, S, dim), lambda b: (b, 0, 0)),
        compiler_params=pltpu.CompilerParams(dimension_semantics=("parallel",)),
        cost_estimate=pl.CostEstimate(
            flops=4 * B * H * S * S * D,          # QK^T + PV
            transcendentals=B * H * S * S,        # exp
            bytes_accessed=4 * (4 * B * S * dim + 2 * S * D + S * S),
        ),
    )(q, k, v, cos, sin_signed, bias)


# ------------------------------ module wrapper ----------------------------------

def multi_head_attention(hidden_states, params, n_heads, rope_theta=10000.0):
    """hidden_states: (B, S, dim) -> (B, S, dim). `params` from prepare_params()."""
    B, S, dim = hidden_states.shape
    head_dim = dim // n_heads
    M = B * S

    x2 = hidden_states.reshape(M, dim)
    q, k, v = qkv_proj(x2, params["wqkv_t"], dim)           # each (M, dim)

    # Pure metadata reshapes — heads stay in (B, S, H, D), no HBM transpose.
    q = q.reshape(B, S, n_heads, head_dim)
    k = k.reshape(B, S, n_heads, head_dim)
    v = v.reshape(B, S, n_heads, head_dim)

    cos, sin_signed = rope_tables(S, head_dim, rope_theta)
    bias = causal_bias(S)

    attn = attention(q, k, v, cos, sin_signed, bias)        # (B, S, dim), lane-dense
    out = linear(attn.reshape(M, dim), params["o_w_t"])     # (M, dim)
    return out.reshape(B, S, dim)


# ------------------------------ pure-JAX reference -------------------------------

def reference_mha(x, torch_params, n_heads, rope_theta=10000.0):
    B, S, dim = x.shape
    D = dim // n_heads
    p = torch_params
    q = (x @ p["q_w"].T).reshape(B, S, n_heads, D).transpose(0, 2, 1, 3)
    k = (x @ p["k_w"].T).reshape(B, S, n_heads, D).transpose(0, 2, 1, 3)
    v = (x @ p["v_w"].T).reshape(B, S, n_heads, D).transpose(0, 2, 1, 3)

    inv_freq = 1.0 / (rope_theta ** (jnp.arange(0, D, 2, dtype=jnp.float32) / D))
    t = jnp.arange(S, dtype=jnp.float32)
    freqs = jnp.outer(t, inv_freq)
    emb = jnp.concatenate([freqs, freqs], axis=-1)
    cos, sin = jnp.cos(emb), jnp.sin(emb)

    def rot_half(t_):
        return jnp.concatenate([-t_[..., D // 2:], t_[..., :D // 2]], axis=-1)

    q = q * cos + rot_half(q) * sin
    k = k * cos + rot_half(k) * sin
    scores = jnp.einsum("bhqd,bhkd->bhqk", q, k) / math.sqrt(D)
    mask = jnp.triu(jnp.ones((S, S), dtype=bool), k=1)
    scores = jnp.where(mask, -jnp.inf, scores)
    p_att = jax.nn.softmax(scores, axis=-1)
    out = jnp.einsum("bhqk,bhkd->bhqd", p_att, v)
    out = out.transpose(0, 2, 1, 3).reshape(B, S, dim)
    return out @ p["o_w"].T


# ----------------------------------- main ----------------------------------------

if __name__ == "__main__":
    # Small config consistent with the module (dim divisible by n_heads).
    batch, seq_len, dim, n_heads = 2, 8, 128, 4
    rope_theta = 10000.0

    key = jax.random.PRNGKey(0)
    kx, kq, kk, kv, ko = jax.random.split(key, 5)

    x = jax.random.normal(kx, (batch, seq_len, dim), dtype=jnp.float32)
    torch_params = {
        # nn.Linear weight layout: (out_features, in_features), no bias
        "q_w": 0.02 * jax.random.normal(kq, (dim, dim), dtype=jnp.float32),
        "k_w": 0.02 * jax.random.normal(kk, (dim, dim), dtype=jnp.float32),
        "v_w": 0.02 * jax.random.normal(kv, (dim, dim), dtype=jnp.float32),
        "o_w": 0.02 * jax.random.normal(ko, (dim, dim), dtype=jnp.float32),
    }
    params = prepare_params(torch_params)

    out = multi_head_attention(x, params, n_heads, rope_theta)
    out = jax.block_until_ready(out)

    ref = reference_mha(x, torch_params, n_heads, rope_theta)
    assert out.shape == (batch, seq_len, dim)
    # bf16 MXU inputs (f32 accumulation) per perf review -> compare against the
    # full-f32 reference with a correspondingly looser tolerance.
    assert jnp.allclose(out, ref, atol=2e-2, rtol=2e-2), "mismatch vs JAX reference"

    print("KERNEL_OK")
</pallas_src>

<mosaic_0001>
module attributes {stable_mosaic.version = 11 : i64} {
  func.func @_qkv_proj_kernel(%arg0: i32, %arg1: memref<16x128xf32, #tpu.memory_space<vmem>>, %arg2: memref<128x384xf32, #tpu.memory_space<vmem>>, %arg3: memref<16x128xf32, #tpu.memory_space<vmem>>, %arg4: memref<16x128xf32, #tpu.memory_space<vmem>>, %arg5: memref<16x128xf32, #tpu.memory_space<vmem>>) attributes {dimension_semantics = [#tpu.dimension_semantics<parallel>], iteration_bounds = array<i64: 1>, scalar_prefetch = 0 : i64, scratch_operands = 0 : i64, tpu.core_type = #tpu.core_type<tc>, window_params = [{transform_indices = @transform_0, window_bounds = array<i64: 16, 128>}, {pipeline_mode = #tpu.pipeline_mode<synchronous>, transform_indices = @transform_1, window_bounds = array<i64: 128, 384>}, {transform_indices = @transform_2, window_bounds = array<i64: 16, 128>}, {transform_indices = @transform_3, window_bounds = array<i64: 16, 128>}, {transform_indices = @transform_4, window_bounds = array<i64: 16, 128>}]} {
    %c0 = arith.constant 0 : index
    %c0_0 = arith.constant 0 : index
    %0 = vector.load %arg1[%c0, %c0_0] : memref<16x128xf32, #tpu.memory_space<vmem>>, vector<16x128xf32>
    %1 = arith.truncf %0 : vector<16x128xf32> to vector<16x128xbf16>
    %c0_1 = arith.constant 0 : index
    %c0_2 = arith.constant 0 : index
    %2 = vector.load %arg2[%c0_1, %c0_2] : memref<128x384xf32, #tpu.memory_space<vmem>>, vector<128x384xf32>
    %3 = arith.truncf %2 : vector<128x384xf32> to vector<128x384xbf16>
    %cst = arith.constant dense<0.000000e+00> : vector<16x384xf32>
    %4 = tpu.matmul %1, %3, %cst {dimension_numbers = #tpu.dot_dimension_numbers<[1], [0], [0], [1], [0, 0, 1, 1], [], []>} : vector<16x128xbf16>, vector<128x384xbf16>, vector<16x384xf32> -> vector<16x384xf32>
    %5 = vector.extract_strided_slice %4 {offsets = [0, 0], sizes = [16, 128], strides = [1, 1]} : vector<16x384xf32> to vector<16x128xf32>
    %c0_3 = arith.constant 0 : index
    %c0_4 = arith.constant 0 : index
    %6 = vector.load %arg3[%c0_3, %c0_4] : memref<16x128xf32, #tpu.memory_space<vmem>>, vector<16x128xf32>
    tpu.vector_store %arg3[%c0_3, %c0_4], %5 {strides = array<i32>} : memref<16x128xf32, #tpu.memory_space<vmem>>, vector<16x128xf32>,
    %7 = vector.extract_strided_slice %4 {offsets = [0, 128], sizes = [16, 128], strides = [1, 1]} : vector<16x384xf32> to vector<16x128xf32>
    %c0_5 = arith.constant 0 : index
    %c0_6 = arith.constant 0 : index
    %8 = vector.load %arg4[%c0_5, %c0_6] : memref<16x128xf32, #tpu.memory_space<vmem>>, vector<16x128xf32>
    tpu.vector_store %arg4[%c0_5, %c0_6], %7 {strides = array<i32>} : memref<16x128xf32, #tpu.memory_space<vmem>>, vector<16x128xf32>,
    %9 = vector.extract_strided_slice %4 {offsets = [0, 256], sizes = [16, 128], strides = [1, 1]} : vector<16x384xf32> to vector<16x128xf32>
    %c0_7 = arith.constant 0 : index
    %c0_8 = arith.constant 0 : index
    %10 = vector.load %arg5[%c0_7, %c0_8] : memref<16x128xf32, #tpu.memory_space<vmem>>, vector<16x128xf32>
    tpu.vector_store %arg5[%c0_7, %c0_8], %9 {strides = array<i32>} : memref<16x128xf32, #tpu.memory_space<vmem>>, vector<16x128xf32>,
    return
  }
  func.func @transform_0(%arg0: i32) -> (i32, i32) {
    %c0_i32 = arith.constant 0 : i32
    %c0_i32_0 = arith.constant 0 : i32
    return %arg0, %c0_i32 : i32, i32
  }
  func.func @transform_1(%arg0: i32) -> (i32, i32) {
    %c0_i32 = arith.constant 0 : i32
    %c0_i32_0 = arith.constant 0 : i32
    %c0_i32_1 = arith.constant 0 : i32
    return %c0_i32, %c0_i32_0 : i32, i32
  }
  func.func @transform_2(%arg0: i32) -> (i32, i32) {
    %c0_i32 = arith.constant 0 : i32
    %c0_i32_0 = arith.constant 0 : i32
    return %arg0, %c0_i32 : i32, i32
  }
  func.func @transform_3(%arg0: i32) -> (i32, i32) {
    %c0_i32 = arith.constant 0 : i32
    %c0_i32_0 = arith.constant 0 : i32
    return %arg0, %c0_i32 : i32, i32
  }
  func.func @transform_4(%arg0: i32) -> (i32, i32) {
    %c0_i32 = arith.constant 0 : i32
    %c0_i32_0 = arith.constant 0 : i32
    return %arg0, %c0_i32 : i32, i32
  }
}

</mosaic_0001>

<bundles_post_ra>
// kernel: tpu_custom_call.1
= control target key start
LH: loop header
LB: loop body
LE: loop exit
PB: predicated region body
PF: predicated region fallthrough
CT: control target
= control target key end

     0   :  { %10 = vsyncpa [#allocation3], 0  ;;  %s550_s0 = inlined_call_operand.hbm [shape: f32[16,128], index: 0, kind: input, shape index: {}]   ;;  %s551_s1 = inlined_call_operand.hbm [shape: f32[128,384], index: 1, kind: input, shape index: {}]   ;;  %s552_s2 = inlined_call_operand.hbm [shape: f32[16,128], index: 2, kind: output, shape index: {0}]   ;;  %s553_s3 = inlined_call_operand.hbm [shape: f32[16,128], index: 3, kind: output, shape index: {1}]   ;;  %s554_s4 = inlined_call_operand.hbm [shape: f32[16,128], index: 4, kind: output, shape index: {2}]  }
   0x1   :  { %11 = vsyncpa [#allocation6], 0 }
   0x2   :  { %12 = vsyncpa [#allocation4], 0 }
   0x3   :  { %13 = vsyncpa [#allocation9], 0  ;;  %s418_s15 = smov [#allocation2]   ;;  %s300_s19 = scalar_lea.hbm %s550_s0, 256 }
   0x4   :  { %s19_s16 = sshll.u32 %s418_s15, 4  ;;  %p301_p0 = scmp.ne.s32.totalorder %s550_s0, %s300_s19  ;;  %s20_s16 = int_to_ptr.vmem [resolvable:$true] %s19_s16 }
   0x5   :  { %p304_p1 = scmp.lt.u32.totalorder %s300_s19, %s550_s0 }
   0x7   :  { %p306_p2 = pnand %p304_p1, %p301_p0 }
   0x9   :  { %309 = shalt.err (!%p306_p2)
}
   0xa   :  { %s310_s24 = scalar_lea.vmem %s20_s16, 256  ;;  %p315_p4 = scmp.lt.s32.totalorder %s20_s16, %s20_s16 }
   0xb   :  { %p311_p3 = scmp.ne.s32.totalorder %s20_s16, %s310_s24  ;;  %p316_p5 = scmp.lt.s32.totalorder %s310_s24, %s310_s24 }
   0xd   :  { %p317_p6 = por %p316_p5, %p315_p4 }
   0xf   :  { %p318_p7 = pnand %p317_p6, %p311_p3 }
  0x11   :  { %321 = shalt.err (!%p318_p7)
}
  0x12   :  { %s419_s25 = smov 128   ;;  %s420_s26 = smov 8  }
  0x13   :  { %25 = dma.hbm_to_vmem [thread:$0]  %s550_s0, 256, %s20_s16, [#allocation3], %s419_s25, %s419_s25, %s420_s26  }
  0x14   :  { %s421_s29 = smov [#allocation5]   ;;  %s322_s7 = scalar_lea.hbm %s551_s1, 6144 }
  0x15   :  { %s31_s30 = sshll.u32 %s421_s29, 4  ;;  %p323_p8 = scmp.ne.s32.totalorder %s551_s1, %s322_s7  ;;  %s32_s30 = int_to_ptr.vmem [resolvable:$true] %s31_s30 }
  0x16   :  { %p326_p9 = scmp.lt.u32.totalorder %s322_s7, %s551_s1 }
  0x18   :  { %p328_p10 = pnand %p326_p9, %p323_p8 }
  0x1a   :  { %331 = shalt.err (!%p328_p10)
}
  0x1b   :  { %s332_s12 = scalar_lea.vmem %s32_s30, 6144  ;;  %p337_p12 = scmp.lt.s32.totalorder %s32_s30, %s32_s30 }
  0x1c   :  { %p333_p11 = scmp.ne.s32.totalorder %s32_s30, %s332_s12  ;;  %p338_p13 = scmp.lt.s32.totalorder %s332_s12, %s332_s12 }
  0x1e   :  { %p339_p0 = por %p338_p13, %p337_p12 }
  0x20   :  { %p340_p1 = pnand %p339_p0, %p333_p11 }
  0x22   :  { %343 = shalt.err (!%p340_p1)
}
  0x23   :  { %s422_s0 = smov 384   ;;  %s423_s13 = smov 24  }
  0x24   :  { %37 = dma.hbm_to_vmem [thread:$0]  %s551_s1, 6144, %s32_s30, [#allocation6], %s422_s0, %s422_s0, %s423_s13  }
  0x25   :  { %410 = dma.done.wait [#allocation3], 256  }
  0x26   :  { %411 = vsyncadd [#allocation3], 4294967040 }
  0x27   :  { %412 = dma.done.wait [#allocation6], 6144  }
  0x28   :  { %413 = vsyncadd [#allocation6], 4294961152  ;;  %v424_v0 = vmov 0.0   ;;  %vm425_vm0 = vmmov 0   ;;  %v426_v1 = vmov 0   ;;  %v49_v2 = vld [vmem:[#allocation5 + $0x8] sm:$0xff] }
  0x29   :  { %268 = vmatprep.subr.bf16.mxu1 %v424_v0  ;;  %284 = vmatprep.mubr.msk.bf16.mxu1 %vm425_vm0, %v424_v0  ;;  %v52_v3 = vld [vmem:[#allocation5 + $0x20] sm:$0xff]  ;;  %v50_v4 = vld [vmem:[#allocation5 + $0x10] sm:$0xff]  ;;  %v53_v6 = vld [vmem:[#allocation5 + $0x28] sm:$0xff]  ;;  %s427_s1 = smov [#allocation7]   ;;  %s428_s17 = smov [#allocation8]  }
  0x2a   :  { %152 = vmatprep.mubr.bf16.mxu0 %v426_v1  ;;  %v97_v5 = vpack.c.bf16 %v52_v3, %v49_v2  ;;  %v48_v7 = vld [vmem:[#allocation5] sm:$0xff]  ;;  %v51_v8 = vld [vmem:[#allocation5 + $0x18] sm:$0xff]  ;;  %v98_v9 = vpack.c.bf16 %v53_v6, %v50_v4  ;;  %v58_v12 = vld [vmem:[#allocation5 + $0x50] sm:$0xff]  ;;  %s215_s16 = sshll.u32 %s427_s1, 4  ;;  %s227_s18 = sshll.u32 %s428_s17, 4  ;;  %s216_s16 = int_to_ptr.vmem [resolvable:$true] %s215_s16  ;;  %s491_s18 = int_to_ptr.vmem [resolvable:$true] %s227_s18 }
  0x2b   :  { %v96_v10 = vpack.c.bf16 %v51_v8, %v48_v7  ;;  %v55_v11 = vld [vmem:[#allocation5 + $0x38] sm:$0xff]  ;;  %v56_v13 = vld [vmem:[#allocation5 + $0x40] sm:$0xff]  ;;  %v54_v16 = vld [vmem:[#allocation5 + $0x30] sm:$0xff]  ;;  %s429_s19 = smov [#allocation10]   ;;  %s344_s21 = scalar_lea.vmem %s216_s16, 256 }
  0x2c   :  { %120 = vmatprep.subr.bf16.mxu0 %v97_v5  ;;  %v100_v14 = vpack.c.bf16 %v58_v12, %v55_v11  ;;  %v59_v15 = vld [vmem:[#allocation5 + $0x58] sm:$0xff]  ;;  %v57_v17 = vld [vmem:[#allocation5 + $0x48] sm:$0xff]  ;;  %269 = vmatpush3.bf16.msra.mxu1 %v98_v9  ;;  %v64_v21 = vld [vmem:[#allocation5 + $0x80] sm:$0xff]  ;;  %s239_s20 = sshll.u32 %s429_s19, 4  ;;  %p345_p2 = scmp.ne.s32.totalorder %s216_s16, %s344_s21  ;;  %s493_s20 = int_to_ptr.vmem [resolvable:$true] %s239_s20 }
  0x2d   :  { %121 = vmatpush1.bf16.msra.mxu0 %v96_v10  ;;  %v101_v18 = vpack.c.bf16 %v59_v15, %v56_v13  ;;  %v99_v19 = vpack.c.bf16 %v57_v17, %v54_v16  ;;  %v61_v20 = vld [vmem:[#allocation5 + $0x68] sm:$0xff]  ;;  %v62_v22 = vld [vmem:[#allocation5 + $0x70] sm:$0xff]  ;;  %270 = vmatprep.subr.bf16.mxu1 %v424_v0  ;;  %v60_v25 = vld [vmem:[#allocation5 + $0x60] sm:$0xff]  ;;  %p349_p3 = scmp.lt.s32.totalorder %s216_s16, %s216_s16  ;;  %p350_p4 = scmp.lt.s32.totalorder %s344_s21, %s344_s21 }
  0x2e   :  { %122 = vmatprep.subr.bf16.mxu0 %v100_v14  ;;  %v103_v23 = vpack.c.bf16 %v64_v21, %v61_v20  ;;  %v65_v24 = vld [vmem:[#allocation5 + $0x88] sm:$0xff]  ;;  %v63_v26 = vld [vmem:[#allocation5 + $0x78] sm:$0xff]  ;;  %v70_v28 = vld [vmem:[#allocation5 + $0xb0] sm:$0xff] }
  0x2f   :  { %v67_v27 = vld [vmem:[#allocation5 + $0x98] sm:$0xff]  ;;  %v104_v29 = vpack.c.bf16 %v65_v24, %v62_v22  ;;  %v102_v30 = vpack.c.bf16 %v63_v26, %v60_v25  ;;  %v68_v31 = vld [vmem:[#allocation5 + $0xa0] sm:$0xff]  ;;  %v66_v34 = vld [vmem:[#allocation5 + $0x90] sm:$0xff]  ;;  %p351_p5 = por %p350_p4, %p349_p3 }
  0x30   :  { %271 = vmatpush3.bf16.msra.mxu1 %v101_v18  ;;  %v106_v32 = vpack.c.bf16 %v70_v28, %v67_v27  ;;  %v71_v33 = vld [vmem:[#allocation5 + $0xb8] sm:$0xff]  ;;  %v69_v35 = vld [vmem:[#allocation5 + $0xa8] sm:$0xff]  ;;  %v76_v37 = vld [vmem:[#allocation5 + $0xe0] sm:$0xff] }
  0x31   :  { %123 = vmatpush1.bf16.msra.mxu0 %v99_v19  ;;  %272 = vmatprep.subr.bf16.mxu1 %v424_v0  ;;  %v73_v36 = vld [vmem:[#allocation5 + $0xc8] sm:$0xff]  ;;  %v107_v38 = vpack.c.bf16 %v71_v33, %v68_v31  ;;  %v105_v39 = vpack.c.bf16 %v69_v35, %v66_v34  ;;  %v74_v40 = vld [vmem:[#allocation5 + $0xd0] sm:$0xff]  ;;  %v72_v43 = vld [vmem:[#allocation5 + $0xc0] sm:$0xff]  ;;  %p352_p6 = pnand %p351_p5, %p345_p2 }
  0x32   :  { %124 = vmatprep.subr.bf16.mxu0 %v103_v23  ;;  %v109_v41 = vpack.c.bf16 %v76_v37, %v73_v36  ;;  %v77_v42 = vld [vmem:[#allocation5 + $0xe8] sm:$0xff]  ;;  %v75_v44 = vld [vmem:[#allocation5 + $0xd8] sm:$0xff]  ;;  %v82_v46 = vld [vmem:[#allocation5 + $0x110] sm:$0xff] }
  0x33   :  { %v79_v45 = vld [vmem:[#allocation5 + $0xf8] sm:$0xff]  ;;  %v110_v47 = vpack.c.bf16 %v77_v42, %v74_v40  ;;  %v108_v48 = vpack.c.bf16 %v75_v44, %v72_v43  ;;  %v80_v49 = vld [vmem:[#allocation5 + $0x100] sm:$0xff]  ;;  %v78_v52 = vld [vmem:[#allocation5 + $0xf0] sm:$0xff] }
  0x34   :  { %273 = vmatpush3.bf16.msra.mxu1 %v104_v29  ;;  %v112_v50 = vpack.c.bf16 %v82_v46, %v79_v45  ;;  %v83_v51 = vld [vmem:[#allocation5 + $0x118] sm:$0xff]  ;;  %v81_v53 = vld [vmem:[#allocation5 + $0x108] sm:$0xff]  ;;  %v88_v55 = vld [vmem:[#allocation5 + $0x140] sm:$0xff] }
  0x35   :  { %125 = vmatpush1.bf16.msra.mxu0 %v102_v30  ;;  %274 = vmatprep.subr.bf16.mxu1 %v424_v0  ;;  %v85_v54 = vld [vmem:[#allocation5 + $0x128] sm:$0xff]  ;;  %v113_v56 = vpack.c.bf16 %v83_v51, %v80_v49  ;;  %v111_v57 = vpack.c.bf16 %v81_v53, %v78_v52  ;;  %v86_v58 = vld [vmem:[#allocation5 + $0x130] sm:$0xff]  ;;  %v84_v61 = vld [vmem:[#allocation5 + $0x120] sm:$0xff] }
  0x36   :  { %126 = vmatprep.subr.bf16.mxu0 %v106_v32  ;;  %v115_v59 = vpack.c.bf16 %v88_v55, %v85_v54  ;;  %v89_v60 = vld [vmem:[#allocation5 + $0x148] sm:$0xff]  ;;  %v87_v62 = vld [vmem:[#allocation5 + $0x138] sm:$0xff]  ;;  %v94_v1 = vld [vmem:[#allocation5 + $0x170] sm:$0xff] }
  0x37   :  { %v91_v63 = vld [vmem:[#allocation5 + $0x158] sm:$0xff]  ;;  %v116_v2 = vpack.c.bf16 %v89_v60, %v86_v58  ;;  %v114_v3 = vpack.c.bf16 %v87_v62, %v84_v61  ;;  %v92_v4 = vld [vmem:[#allocation5 + $0x160] sm:$0xff]  ;;  %v90_v7 = vld [vmem:[#allocation5 + $0x150] sm:$0xff] }
  0x38   :  { %275 = vmatpush3.bf16.msra.mxu1 %v107_v38  ;;  %v118_v5 = vpack.c.bf16 %v94_v1, %v91_v63  ;;  %v95_v6 = vld [vmem:[#allocation5 + $0x178] sm:$0xff]  ;;  %v93_v8 = vld [vmem:[#allocation5 + $0x168] sm:$0xff]  ;;  %v45_v11 = vld [vmem:[#allocation2] sm:$0xff] }
  0x39   :  { %127 = vmatpush1.bf16.msra.mxu0 %v105_v39  ;;  %276 = vmatprep.subr.bf16.mxu1 %v424_v0  ;;  %v119_v9 = vpack.c.bf16 %v95_v6, %v92_v4  ;;  %v117_v10 = vpack.c.bf16 %v93_v8, %v90_v7  ;;  %v46_v12 = vld [vmem:[#allocation2 + $0x8] sm:$0xff] }
  0x3a   :  { %128 = vmatprep.subr.bf16.mxu0 %v109_v41  ;;  %v47_v13 = vpack.c.bf16 %v46_v12, %v45_v11 }
  0x3c   :  { %277 = vmatpush3.bf16.msra.mxu1 %v110_v47 }
  0x3d   :  { %129 = vmatpush1.bf16.msra.mxu0 %v108_v48  ;;  %278 = vmatprep.subr.bf16.mxu1 %v424_v0 }
  0x3e   :  { %130 = vmatprep.subr.bf16.mxu0 %v112_v50 }
  0x40   :  { %279 = vmatpush3.bf16.msra.mxu1 %v113_v56 }
  0x41   :  { %131 = vmatpush1.bf16.msra.mxu0 %v111_v57  ;;  %280 = vmatprep.subr.bf16.mxu1 %v424_v0 }
  0x42   :  { %132 = vmatprep.subr.bf16.mxu0 %v115_v59 }
  0x44   :  { %281 = vmatpush3.bf16.msra.mxu1 %v116_v2 }
  0x45   :  { %133 = vmatpush1.bf16.msra.mxu0 %v114_v3  ;;  %282 = vmatprep.subr.bf16.mxu1 %v424_v0 }
  0x46   :  { %134 = vmatprep.subr.bf16.mxu0 %v118_v5 }
  0x48   :  { %283 = vmatpush3.bf16.msra.mxu1 %v119_v9 }
  0x49   :  { %135 = vmatpush1.bf16.msra.mxu0 %v117_v10 }
  0x4b   :  { %285 = vmatmul.mubr.bf16.vlgmr.msra.gmra.mrb[0].mxu1 %v47_v13 }
  0x4c   :  { %153 = vmatmul.mubr.bf16.vlgmr.msra.gmra.mrb[0].mxu0 %v47_v13 }
 0x11e   :  { %v197_v14 = vpop.f32.mrb[0].mxu1 }
 0x11f   :  { %v154_v15 = vpop.f32.mrb[0].mxu0  ;;  %208 = vst [vmem:[#allocation10] sm:$0xff] %v197_v14  ;;  %v286_v16 = vpop.f32.mrb[1].mxu1 }
 0x120   :  { %204 = vst [vmem:[#allocation7] sm:$0xff] %v154_v15  ;;  %v156_v17 = vpop.f32.mrb[1].mxu0  ;;  %v200_v0 = vpop.f32.mrb[2].mxu1 }
 0x121   :  { %206 = vst [vmem:[#allocation8] sm:$0xff] %v156_v17  ;;  %v158_v18 = vpop.f32.mrb[2].mxu0  ;;  %209 = vst [vmem:[#allocation10 + $0x8] sm:$0xff] %v200_v0  ;;  %v287_v19 = vpop.f32.mrb[3].mxu1 }
 0x122   :  { %205 = vst [vmem:[#allocation7 + $0x8] sm:$0xff] %v158_v18  ;;  %v160_v20 = vpop.f32.mrb[3].mxu0 }
 0x123   :  { %207 = vst [vmem:[#allocation8 + $0x8] sm:$0xff] %v160_v20 }
 0x124   :  { %355 = shalt.err (!%p352_p6)
}
 0x125   :  { %s356_s24 = scalar_lea.hbm %s552_s2, 256 }
 0x126   :  { %p357_p7 = scmp.ne.s32.totalorder %s552_s2, %s356_s24  ;;  %p360_p8 = scmp.lt.u32.totalorder %s356_s24, %s552_s2 }
 0x128   :  { %p362_p9 = pnand %p360_p8, %p357_p7 }
 0x12a   :  { %365 = shalt.err (!%p362_p9)
}
 0x12b   :  { %221 = dma.vmem_to_hbm [thread:$0]  %s216_s16, 256, %s552_s2, [#allocation4], %s419_s25, %s419_s25, %s420_s26  }
 0x12c   :  { %s366_s7 = scalar_lea.vmem %s491_s18, 256  ;;  %p371_p11 = scmp.lt.s32.totalorder %s491_s18, %s491_s18 }
 0x12d   :  { %p367_p10 = scmp.ne.s32.totalorder %s491_s18, %s366_s7  ;;  %p372_p12 = scmp.lt.s32.totalorder %s366_s7, %s366_s7 }
 0x12f   :  { %p373_p13 = por %p372_p12, %p371_p11 }
 0x131   :  { %p374_p0 = pnand %p373_p13, %p367_p10 }
 0x133   :  { %377 = shalt.err (!%p374_p0)
}
 0x134   :  { %s378_s10 = scalar_lea.hbm %s553_s3, 256 }
 0x135   :  { %p379_p1 = scmp.ne.s32.totalorder %s553_s3, %s378_s10  ;;  %p382_p2 = scmp.lt.u32.totalorder %s378_s10, %s553_s3 }
 0x137   :  { %p384_p3 = pnand %p382_p2, %p379_p1 }
 0x139   :  { %387 = shalt.err (!%p384_p3)
}
 0x13a   :  { %233 = dma.vmem_to_hbm [thread:$0]  %s491_s18, 256, %s553_s3, [#allocation9], %s419_s25, %s419_s25, %s420_s26  }
 0x13b   :  { %s388_s15 = scalar_lea.vmem %s493_s20, 256  ;;  %p393_p5 = scmp.lt.s32.totalorder %s493_s20, %s493_s20 }
 0x13c   :  { %p389_p4 = scmp.ne.s32.totalorder %s493_s20, %s388_s15  ;;  %p394_p6 = scmp.lt.s32.totalorder %s388_s15, %s388_s15 }
 0x13e   :  { %p395_p7 = por %p394_p6, %p393_p5 }
 0x140   :  { %p396_p8 = pnand %p395_p7, %p389_p4 }
 0x142   :  { %399 = shalt.err (!%p396_p8)
}
 0x143   :  { %s400_s17 = scalar_lea.hbm %s554_s4, 256 }
 0x144   :  { %p401_p9 = scmp.ne.s32.totalorder %s554_s4, %s400_s17  ;;  %p404_p10 = scmp.lt.u32.totalorder %s400_s17, %s554_s4 }
 0x146   :  { %p406_p11 = pnand %p404_p10, %p401_p9 }
 0x148   :  { %409 = shalt.err (!%p406_p11)
}
 0x149   :  { %245 = dma.vmem_to_hbm [thread:$0]  %s493_s20, 256, %s554_s4, [#allocation9], %s419_s25, %s419_s25, %s420_s26  }
 0x14a   :  { %414 = dma.done.wait [#allocation4], 256  }
 0x14b   :  { %415 = vsyncadd [#allocation4], 4294967040 }
 0x14c   :  { %416 = dma.done.wait [#allocation9], 512  }
 0x14d   :  { %417 = vsyncadd [#allocation9], 4294966784 }
 0x14e   :  { %255 = vsyncpa [#allocation3], 1 }
 0x14f   :  { %256 = vsyncpa [#allocation6], 1 }
 0x150   :  { %257 = vsyncpa [#allocation4], 1 }
 0x151   :  { %258 = vsyncpa [#allocation9], 1 }

</bundles_post_ra>
